<compile_context>
chip_gen: v6e
topology: v6e:2x2x1
jax: 0.10.0
libtpu: 0.0.40
codegen_flags: <defaults>
</compile_context>

<pallas_src>
import jax
import jax.numpy as jnp
from jax.experimental import pallas as pl
from jax.experimental.pallas import tpu as pltpu


def _make_attention_pool_kernel(has_mask):
    """Build the kernel body; `has_mask` specializes away the mask input."""

    def kernel(*refs):
        if has_mask:
            x_ref, w_ref, b_ref, mask_ref, o_ref = refs
        else:
            x_ref, w_ref, b_ref, o_ref = refs
            mask_ref = None

        x = x_ref[...]                       # [nb, T, D] native dtype (no f32 block copy)
        w = w_ref[...]                       # [1, D] f32, lane-dense
        bias = b_ref[0]                      # scalar from SMEM

        # fc = Linear(D, 1) + ReLU.  Lane-reduce over D -> lane-dense [nb, T] scores.
        # The f32 product is a per-tile temporary consumed by the reduce, not a
        # long-lived f32 copy of the whole block.
        score = jnp.sum(x * w[None, :, :], axis=-1) + bias      # [nb, T] f32
        score = jnp.maximum(score, 0.0)

        if has_mask:
            # mask already pre-scaled by -10000 in the wrapper
            score = score + mask_ref[...].astype(jnp.float32)

        # numerically-stable softmax over tokens (lane axis); kept unnormalized here.
        score = score - jnp.max(score, axis=-1, keepdims=True)
        e = jnp.exp(score)                                       # [nb, T] f32
        denom = jnp.sum(e, axis=-1, keepdims=True)               # [nb, 1] f32
        # TODO(synk): nn.Dropout(drop) with drop > 0 not implemented (drop=0.0 -> identity)

        # Pooling on the MXU: batched (1, T) @ (T, D), f32 accumulation, x kept native.
        p = e.astype(x.dtype)[:, None, :]                        # [nb, 1, T]
        acc = jnp.einsum("bqt,btd->bqd", p, x,
                         preferred_element_type=jnp.float32)     # [nb, 1, D] f32
        inv = pl.reciprocal(denom, approx=True)                  # EUP slot, ~free
        o_ref[...] = (acc[:, 0, :] * inv).astype(o_ref.dtype)

    return kernel


def _vmem_capacity_bytes():
    try:
        cap = int(pltpu.get_tpu_info().vmem_capacity_bytes)
        if cap > 0:
            return cap
    except Exception:
        pass
    return 64 << 20  # conservative default (v7x per-TensorCore VMEM)


def _pick_block_b(B, T, D, x_itemsize, mask_itemsize, vmem_cap):
    """Largest batch block whose double-buffered working set fits a VMEM budget."""
    per_row = (2 * T * D * x_itemsize      # input block, double buffered
               + T * D * 4                 # headroom for the f32 score-product temp
               + 2 * D * x_itemsize        # output block, double buffered
               + 2 * T * mask_itemsize     # mask block, double buffered
               + 8 * T * 4)                # small f32 temporaries (score, e, ...)
    budget = int(vmem_cap * 0.4)           # leave room for compiler scratch / spills
    nb = max(1, min(256, budget // max(per_row, 1)))
    if B >= 32:
        # keep >= 4 grid steps (v7x has 2 TensorCores sharing the parallel axis)
        nb = min(nb, max(8, B // 4))
    return int(nb)


def attention_pool(input_, weight, bias, mask=None, *, block_b=None):
    """input_: [B, T, D] (f32/bf16), weight: [D, 1], bias: [1], mask: [B, T] or None."""
    B, T, D = input_.shape
    dtype = input_.dtype
    x_itemsize = jnp.dtype(dtype).itemsize

    w = weight.astype(jnp.float32).reshape(1, D)     # lane-dense weight row
    b = bias.astype(jnp.float32).reshape(1)

    has_mask = mask is not None
    if has_mask:
        # Pre-scale once (mask * -10000) and store in the input dtype
        # (-10000 is exact in bf16) -> half the HBM/VMEM mask footprint vs f32.
        mask_scaled = (mask.astype(dtype) * jnp.asarray(-10000.0, dtype)).reshape(B, T)
        mask_itemsize = x_itemsize
    else:
        mask_scaled = None
        mask_itemsize = 0

    vmem_cap = _vmem_capacity_bytes()
    if block_b is None:
        nb = _pick_block_b(B, T, D, x_itemsize, mask_itemsize, vmem_cap)
    else:
        nb = int(block_b)
    # Legalize: batch block must be a multiple of 8 sublanes or equal the full batch.
    if nb >= B or B <= 8:
        nb = B
    else:
        nb = max(8, min((nb // 8) * 8, (B // 8) * 8))

    # Ragged last block instead of jnp.pad (no extra HBM copy of the input):
    # OOB reads only pollute dead rows; OOB writes are discarded by Pallas.
    grid = (pl.cdiv(B, nb),)

    cost = pl.CostEstimate(
        flops=4 * B * T * D,                                     # score + pooling MACs
        transcendentals=B * T,                                   # exp
        bytes_accessed=(B * T * D + B * D) * x_itemsize + B * T * mask_itemsize,
    )

    in_specs = [
        pl.BlockSpec((nb, T, D), lambda i: (i, 0, 0)),           # input_ (native dtype)
        pl.BlockSpec((1, D), lambda i: (0, 0)),                  # weight row (f32)
        pl.BlockSpec(memory_space=pltpu.MemorySpace.SMEM),       # bias scalar
    ]
    args = [input_, w, b]
    if has_mask:
        in_specs.append(pl.BlockSpec((nb, T), lambda i: (i, 0)))  # pre-scaled 2-D mask
        args.append(mask_scaled)

    vmem_limit = max(32 << 20, int(min(vmem_cap, 128 << 20) * 0.85))

    out = pl.pallas_call(
        _make_attention_pool_kernel(has_mask),
        out_shape=jax.ShapeDtypeStruct((B, D), dtype),
        grid_spec=pltpu.PrefetchScalarGridSpec(
            num_scalar_prefetch=0,
            grid=grid,
            in_specs=in_specs,
            out_specs=pl.BlockSpec((nb, D), lambda i: (i, 0)),
        ),
        compiler_params=pltpu.CompilerParams(
            dimension_semantics=("parallel",),                   # megacore-shardable
            vmem_limit_bytes=vmem_limit,
        ),
        cost_estimate=cost,
    )(*args)
    return out


def attention_pool_ref(input_, weight, bias, mask=None):
    score = jnp.maximum(jnp.einsum("btd,do->bto", input_, weight) + bias, 0.0)[..., 0]
    if mask is not None:
        score = score + mask.astype(input_.dtype) * (-10000.0)
    p = jax.nn.softmax(score, axis=1)
    return jnp.einsum("bt,btd->bd", p, input_)


if __name__ == "__main__":
    # Small shapes consistent with the module: [B, T, D] hidden states + [B, T] mask.
    B, T, D = 12, 8, 32
    key = jax.random.PRNGKey(0)
    k1, k2, k3, k4 = jax.random.split(key, 4)

    x = jax.random.normal(k1, (B, T, D), dtype=jnp.float32)
    w = jax.random.normal(k2, (D, 1), dtype=jnp.float32) * 0.1
    b = jax.random.normal(k3, (1,), dtype=jnp.float32) * 0.1
    # binary mask in {0, 1}; 1 means "mask out" (adds -10000 to the score)
    mask = (jax.random.uniform(k4, (B, T)) > 0.7).astype(jnp.float32)

    ref = attention_pool_ref(x, w, b, mask)

    # auto block size (single block covering the whole small batch)
    out = jax.block_until_ready(attention_pool(x, w, b, mask))
    assert out.shape == (B, D)
    assert jnp.allclose(out, ref, atol=2e-2, rtol=2e-2), "mismatch vs reference (masked)"

    # forced block_b=8 -> 2 grid steps with a ragged (clipped) last block, no jnp.pad
    out_blk = jax.block_until_ready(attention_pool(x, w, b, mask, block_b=8))
    assert jnp.allclose(out_blk, ref, atol=2e-2, rtol=2e-2), "mismatch vs reference (ragged grid)"

    # mask=None specialization (no zero mask streamed through HBM/VMEM)
    out_nm = jax.block_until_ready(attention_pool(x, w, b, None))
    ref_nm = attention_pool_ref(x, w, b, None)
    assert jnp.allclose(out_nm, ref_nm, atol=2e-2, rtol=2e-2), "mismatch vs reference (no mask)"

    print("KERNEL_OK")
</pallas_src>

<mosaic_0001>
module attributes {stable_mosaic.version = 11 : i64} {
  func.func @kernel(%arg0: i32, %arg1: memref<12x8x32xf32, #tpu.memory_space<vmem>>, %arg2: memref<1x32xf32, #tpu.memory_space<vmem>>, %arg3: memref<1xf32, #tpu.memory_space<smem>>, %arg4: memref<12x8xf32, #tpu.memory_space<vmem>>, %arg5: memref<12x32xf32, #tpu.memory_space<vmem>>) attributes {dimension_semantics = [#tpu.dimension_semantics<parallel>], iteration_bounds = array<i64: 1>, scalar_prefetch = 0 : i64, scratch_operands = 0 : i64, tpu.core_type = #tpu.core_type<tc>, window_params = [{transform_indices = @transform_0, window_bounds = array<i64: 12, 8, 32>}, {pipeline_mode = #tpu.pipeline_mode<synchronous>, transform_indices = @transform_1, window_bounds = array<i64: 1, 32>}, {transform_indices = @transform_2, window_bounds = array<i64: 1>}, {transform_indices = @transform_3, window_bounds = array<i64: 12, 8>}, {transform_indices = @transform_4, window_bounds = array<i64: 12, 32>}]} {
    %c0 = arith.constant 0 : index
    %c0_0 = arith.constant 0 : index
    %c0_1 = arith.constant 0 : index
    %0 = vector.load %arg1[%c0, %c0_0, %c0_1] : memref<12x8x32xf32, #tpu.memory_space<vmem>>, vector<12x8x32xf32>
    %c0_2 = arith.constant 0 : index
    %c0_3 = arith.constant 0 : index
    %1 = vector.load %arg2[%c0_2, %c0_3] : memref<1x32xf32, #tpu.memory_space<vmem>>, vector<1x32xf32>
    %c0_4 = arith.constant 0 : index
    %2 = memref.load %arg3[%c0_4] : memref<1xf32, #tpu.memory_space<smem>>
    %3 = vector.shape_cast %1 : vector<1x32xf32> to vector<1x1x32xf32>
    %4 = vector.broadcast %3 : vector<1x1x32xf32> to vector<12x8x32xf32>
    %5 = arith.mulf %0, %4 : vector<12x8x32xf32>
    %cst = arith.constant dense<0.000000e+00> : vector<12x8xf32>
    %6 = vector.multi_reduction <add>, %5, %cst [2] : vector<12x8x32xf32> to vector<12x8xf32>
    %7 = vector.broadcast %2 : f32 to vector<12x8xf32>
    %8 = arith.addf %6, %7 : vector<12x8xf32>
    %cst_5 = arith.constant 0.000000e+00 : f32
    %9 = vector.broadcast %cst_5 : f32 to vector<12x8xf32>
    %10 = arith.maximumf %8, %9 : vector<12x8xf32>
    %c0_6 = arith.constant 0 : index
    %c0_7 = arith.constant 0 : index
    %11 = vector.load %arg4[%c0_6, %c0_7] : memref<12x8xf32, #tpu.memory_space<vmem>>, vector<12x8xf32>
    %12 = arith.addf %10, %11 : vector<12x8xf32>
    %cst_8 = arith.constant dense<0xFF800000> : vector<12xf32>
    %13 = vector.multi_reduction <maximumf>, %12, %cst_8 [1] : vector<12x8xf32> to vector<12xf32>
    %14 = vector.shape_cast %13 : vector<12xf32> to vector<12x1xf32>
    %15 = vector.broadcast %14 : vector<12x1xf32> to vector<12x8xf32>
    %16 = arith.subf %12, %15 : vector<12x8xf32>
    %17 = math.exp %16 : vector<12x8xf32>
    %cst_9 = arith.constant dense<0.000000e+00> : vector<12xf32>
    %18 = vector.multi_reduction <add>, %17, %cst_9 [1] : vector<12x8xf32> to vector<12xf32>
    %19 = vector.shape_cast %18 : vector<12xf32> to vector<12x1xf32>
    %20 = vector.shape_cast %17 : vector<12x8xf32> to vector<12x1x8xf32>
    "tpu.trace_start"() <{level = 10 : i32, message = "bqt,btd->bqd"}> : () -> ()
    %cst_10 = arith.constant dense<0.000000e+00> : vector<12x1x32xf32>
    %21 = tpu.matmul %20, %0, %cst_10 {dimension_numbers = #tpu.dot_dimension_numbers<[2], [1], [1], [2], [0, 0, 0, 1, 1, 2], [0], [0]>} : vector<12x1x8xf32>, vector<12x8x32xf32>, vector<12x1x32xf32> -> vector<12x1x32xf32>
    "tpu.trace_stop"() : () -> ()
    %22 = tpu.reciprocal %19 {approx = true} : vector<12x1xf32> -> vector<12x1xf32>
    %23 = vector.shape_cast %21 : vector<12x1x32xf32> to vector<12x32xf32>
    %24 = vector.broadcast %22 : vector<12x1xf32> to vector<12x32xf32>
    %25 = arith.mulf %23, %24 : vector<12x32xf32>
    %c0_11 = arith.constant 0 : index
    %c0_12 = arith.constant 0 : index
    %26 = vector.load %arg5[%c0_11, %c0_12] : memref<12x32xf32, #tpu.memory_space<vmem>>, vector<12x32xf32>
    tpu.vector_store %arg5[%c0_11, %c0_12], %25 {strides = array<i32>} : memref<12x32xf32, #tpu.memory_space<vmem>>, vector<12x32xf32>,
    return
  }
  func.func @transform_0(%arg0: i32) -> (i32, i32, i32) {
    %c0_i32 = arith.constant 0 : i32
    %c0_i32_0 = arith.constant 0 : i32
    %c0_i32_1 = arith.constant 0 : i32
    return %arg0, %c0_i32, %c0_i32_0 : i32, i32, i32
  }
  func.func @transform_1(%arg0: i32) -> (i32, i32) {
    %c0_i32 = arith.constant 0 : i32
    %c0_i32_0 = arith.constant 0 : i32
    %c0_i32_1 = arith.constant 0 : i32
    return %c0_i32, %c0_i32_0 : i32, i32
  }
  func.func @transform_2(%arg0: i32) -> i32 {
    %c0_i32 = arith.constant 0 : i32
    %c0_i32_0 = arith.constant 0 : i32
    return %c0_i32 : i32
  }
  func.func @transform_3(%arg0: i32) -> (i32, i32) {
    %c0_i32 = arith.constant 0 : i32
    %c0_i32_0 = arith.constant 0 : i32
    return %arg0, %c0_i32 : i32, i32
  }
  func.func @transform_4(%arg0: i32) -> (i32, i32) {
    %c0_i32 = arith.constant 0 : i32
    %c0_i32_0 = arith.constant 0 : i32
    return %arg0, %c0_i32 : i32, i32
  }
}

</mosaic_0001>

<bundles_post_ra>
// kernel: tpu_custom_call.1
= control target key start
LH: loop header
LB: loop body
LE: loop exit
PB: predicated region body
PF: predicated region fallthrough
CT: control target
= control target key end

     0   :  { %10 = vsyncpa [#allocation4], 0  ;;  %s2062_s0 = inlined_call_operand.hbm [shape: f32[12,8,32], index: 0, kind: input, shape index: {}]   ;;  %s2063_s1 = inlined_call_operand.vmem [shape: f32[1,32], index: 1, kind: input, shape index: {}]   ;;  %s2064_s2 = inlined_call_operand.<no memory space> [shape: f32[1], index: 2, kind: input, shape index: {}]   ;;  %s2065_s3 = inlined_call_operand.vmem [shape: f32[12,8], index: 3, kind: input, shape index: {}]   ;;  %s2066_s4 = inlined_call_operand.hbm [shape: f32[12,32], index: 4, kind: output, shape index: {}]  }
   0x1   :  { %11 = vsyncpa [#allocation5], 0  ;;  %s1710_s15 = smov [#allocation3]  }
   0x2   :  { %s17_s16 = sshll.u32 %s1710_s15, 4  ;;  %s18_s16 = int_to_ptr.vmem [resolvable:$true] %s17_s16 }
   0x3   :  { %s1674_s17 = scalar_lea.vmem %s18_s16, 1536  ;;  %p1679_p1 = scmp.lt.s32.totalorder %s18_s16, %s18_s16 }
   0x4   :  { %p1675_p0 = scmp.ne.s32.totalorder %s18_s16, %s1674_s17  ;;  %p1680_p2 = scmp.lt.s32.totalorder %s1674_s17, %s1674_s17 }
   0x6   :  { %p1681_p3 = por %p1680_p2, %p1679_p1 }
   0x8   :  { %p1682_p4 = pnand %p1681_p3, %p1675_p0 }
   0xa   :  { %1685 = shalt.err (!%p1682_p4)
}
   0xb   :  { %s1711_s18 = smov 128   ;;  %s1712_s19 = smov 8  }
   0xc   :  { %23 = dma.hbm_to_vmem [thread:$0]  %s2062_s0, 1536, %s18_s16, [#allocation4], %s1711_s18, %s1711_s18, %s1712_s19  }
   0xd   :  { %1706 = dma.done.wait [#allocation4], 1536  }
   0xe   :  { %1707 = vsyncadd [#allocation4], 4294965760  ;;  %v131_v0 = vlaneseq  ;;  %v1753_v4 = vld [vmem:[#allocation3 + $0x10] sm:$0xff]  ;;  %v1758_v5 = vld [vmem:[%s2063_s1] ss:$0 sm:$0xff]  ;;  %vm65_vm0 = vcmask 261120  }
   0xf   :  { %v1760_v6 = vld [vmem:[#allocation3] sm:$0xff]  ;;  %v55_v7 = vmul.f32 %v1758_v5, %v1753_v4  ;;  %v1766_v9 = vld [vmem:[#allocation3 + $0x18] sm:$0xff]  ;;  %v1768_v10 = vld [vmem:[#allocation3 + $0x8] sm:$0xff]  ;;  %v1713_v34 = vmov 0   ;;  %vm337_vm1 = vcmask 1041409   ;;  %vm339_vm2 = vcmask 1042434  }
  0x10   :  { %v1748_v1 = vshrl.u32 %v131_v0, 7  ;;  %v288_v2 = vand.u32 127, %v131_v0  ;;  %v53_v8 = vmul.f32 %v1758_v5, %v1760_v6  ;;  %v56_v11 = vmul.f32 %v1758_v5, %v1766_v9  ;;  %v1774_v13 = vld [vmem:[#allocation3 + $0x28] sm:$0xff]  ;;  %v1776_v14 = vld [vmem:[#allocation3 + $0x20] sm:$0xff]  ;;  %v1786_v21 = vld [vmem:[#allocation3 + $0x38] sm:$0xff]  ;;  %1636 = vset.pattern.permute.xlu1 %v1713_v34  ;;  %1637 = vset.pattern.permute.xlu0 %v1713_v34 }
  0x11   :  { %v54_v12 = vmul.f32 %v1758_v5, %v1768_v10  ;;  %v72_v15 = vsel %vm65_vm0, %v55_v7, 0.0  ;;  %v58_v19 = vmul.f32 %v1758_v5, %v1774_v13  ;;  %v57_v20 = vmul.f32 %v1758_v5, %v1776_v14  ;;  %v1788_v22 = vld [vmem:[#allocation3 + $0x30] sm:$0xff]  ;;  %v127_v30 = vld [vmem:[%s2065_s3] sm:$0xff]  ;;  %v1820_v41 = vld [vmem:[#allocation3 + $0x48] sm:$0xff] }
  0x12   :  { %v1751_v3 = vsub.s32 %v288_v2, %v1748_v1  ;;  %v66_v16 = vsel %vm65_vm0, %v53_v8, 0.0  ;;  %73 = vadd.xlane.f32.xlu1 %v72_v15  ;;  %v75_v17 = vsel %vm65_vm0, %v56_v11, 0.0  ;;  %v60_v25 = vmul.f32 %v1758_v5, %v1786_v21  ;;  %v1824_v43 = vld [vmem:[#allocation3 + $0x40] sm:$0xff]  ;;  %v1829_v46 = vld [vmem:[#allocation3 + $0x50] sm:$0xff]  ;;  %v128_v56 = vld [vmem:[%s2065_s3 + $0x8] sm:$0xf] }
  0x13   :  { %67 = vadd.xlane.f32.xlu0 %v66_v16  ;;  %v69_v18 = vsel %vm65_vm0, %v54_v12, 0.0  ;;  %v81_v23 = vsel %vm65_vm0, %v58_v19, 0.0  ;;  %v78_v24 = vsel %vm65_vm0, %v57_v20, 0.0  ;;  %v59_v26 = vmul.f32 %v1758_v5, %v1788_v22  ;;  %v1851_v61 = vld [vmem:[#allocation3 + $0x58] sm:$0xff] }
  0x14   :  { %v87_v27 = vsel %vm65_vm0, %v60_v25, 0.0  ;;  %v1799_v29 = vsub.s32 1, %v1748_v1  ;;  %v1806_v32 = vsub.s32 2, %v1748_v1  ;;  %v1809_v33 = vsub.s32 0, %v1748_v1 }
  0x15   :  { %v84_v28 = vsel %vm65_vm0, %v59_v26, 0.0  ;;  %v1813_v36 = vsub.s32 3, %v1748_v1  ;;  %v161_v38 = vsub.s32 4, %v1748_v1  ;;  %v62_v42 = vmul.f32 %v1758_v5, %v1820_v41 }
  0x16   :  { %76 = vadd.xlane.f32.xlu1 %v75_v17  ;;  %v141_v31 = vrot.slane %v127_v30, %v1799_v29  ;;  %v148_v35 = vrot.slane %v127_v30, %v1806_v32  ;;  %v134_v37 = vrot.slane %v127_v30, %v1809_v33  ;;  %v61_v45 = vmul.f32 %v1758_v5, %v1824_v43 }
  0x17   :  { %70 = vadd.xlane.f32.xlu0 %v69_v18  ;;  %v155_v39 = vrot.slane %v127_v30, %v1813_v36  ;;  %v162_v40 = vrot.slane %v127_v30, %v161_v38  ;;  %v93_v44 = vsel %vm65_vm0, %v62_v42, 0.0  ;;  %v63_v48 = vmul.f32 %v1758_v5, %v1829_v46 }
  0x18   :  { %v90_v47 = vsel %vm65_vm0, %v61_v45, 0.0  ;;  %v168_v50 = vsub.s32 5, %v1748_v1  ;;  %v175_v51 = vsub.s32 6, %v1748_v1  ;;  %v182_v54 = vsub.s32 7, %v1748_v1 }
  0x19   :  { %v96_v49 = vsel %vm65_vm0, %v63_v48, 0.0  ;;  %v190_v57 = vrot.slane %v128_v56, %v1809_v33  ;;  %v197_v58 = vrot.slane %v128_v56, %v1799_v29  ;;  %v204_v59 = vrot.slane %v128_v56, %v1806_v32 }
  0x1a   :  { %82 = vadd.xlane.f32.xlu1 %v81_v23  ;;  %v169_v52 = vrot.slane %v127_v30, %v168_v50  ;;  %v176_v53 = vrot.slane %v127_v30, %v175_v51  ;;  %v183_v55 = vrot.slane %v127_v30, %v182_v54  ;;  %v211_v60 = vrot.slane %v128_v56, %v1813_v36 }
  0x1b   :  { %79 = vadd.xlane.f32.xlu0 %v78_v24  ;;  %v64_v62 = vmul.f32 %v1758_v5, %v1851_v61  ;;  %v1859_v11 = vstv %s2064_s2  ;;  %vm341_vm3 = vcmask 1043459   ;;  %vm343_vm4 = vcmask 1044484   ;;  %s1716_s2 = smov [#allocation6]  }
  0x1c   :  { %vm345_vm5 = vcmask 1045509   ;;  %vm347_vm6 = vcmask 1046534   ;;  %vm349_vm7 = vcmask 1047559   ;;  %vm356_vm8 = vcmask 64512   ;;  %s1520_s27 = sshll.u32 %s1716_s2, 4  ;;  %s1521_s27 = int_to_ptr.vmem [resolvable:$true] %s1520_s27 }
  0x1d   :  { %v99_v63 = vsel %vm65_vm0, %v64_v62, 0.0  ;;  %vm360_vm9 = vcmask 60416   ;;  %vm1715_vm10 = vmmov 0   ;;  %vm1513_vm11 = vcmask 257024   ;;  %s1686_s28 = scalar_lea.vmem %s1521_s27, 256  ;;  %p1691_p6 = scmp.lt.s32.totalorder %s1521_s27, %s1521_s27 }
  0x1e   :  { %88 = vadd.xlane.f32.xlu1 %v87_v27  ;;  %p1687_p5 = scmp.ne.s32.totalorder %s1521_s27, %s1686_s28  ;;  %p1692_p7 = scmp.lt.s32.totalorder %s1686_s28, %s1686_s28 }
  0x1f   :  { %85 = vadd.xlane.f32.xlu0 %v84_v28 }
  0x20   :  { %p1693_p8 = por %p1692_p7, %p1691_p6 }
  0x22   :  { %p1694_p9 = pnand %p1693_p8, %p1687_p5 }
  0x2f   :  { %143 = vbcast.lane.b32.xlu1 %v141_v31, 256 }
  0x33   :  { %150 = vbcast.lane.b32.xlu1 %v148_v35, 256 }
  0x35   :  { %136 = vbcast.lane.b32.xlu0 %v134_v37, 256 }
  0x37   :  { %157 = vbcast.lane.b32.xlu1 %v155_v39, 256 }
  0x39   :  { %164 = vbcast.lane.b32.xlu0 %v162_v40, 256 }
  0x58   :  { %94 = vadd.xlane.f32.xlu0 %v93_v44 }
  0x5b   :  { %91 = vadd.xlane.f32.xlu1 %v90_v47 }
  0x5f   :  { %97 = vadd.xlane.f32.xlu1 %v96_v49 }
  0x6e   :  { %171 = vbcast.lane.b32.xlu0 %v169_v52, 256 }
  0x70   :  { %178 = vbcast.lane.b32.xlu1 %v176_v53, 256 }
  0x74   :  { %185 = vbcast.lane.b32.xlu1 %v183_v55, 256 }
  0x78   :  { %192 = vbcast.lane.b32.xlu1 %v190_v57, 256 }
  0x7c   :  { %199 = vbcast.lane.b32.xlu1 %v197_v58, 256 }
  0x80   :  { %206 = vbcast.lane.b32.xlu1 %v204_v59, 256 }
  0x84   :  { %213 = vbcast.lane.b32.xlu1 %v211_v60, 256 }
  0x8d   :  { %100 = vadd.xlane.f32.xlu0 %v99_v63 }
  0x9b   :  { %v74_v0 = vpop.xlane.xlu1 %73 }
  0x9c   :  { %v68_v2 = vpop.xlane.xlu0 %67  ;;  %v105_v5 = vadd.f32 %v1859_v11, %v74_v0 }
  0x9d   :  { %v103_v16 = vadd.f32 %v1859_v11, %v68_v2 }
  0x9e   :  { %v117_v25 = vmax.f32 %v105_v5, 0.0 }
  0x9f   :  { %v77_v7 = vpop.xlane.xlu1 %76  ;;  %v115_v19 = vmax.f32 %v103_v16, 0.0 }
  0xa0   :  { %v71_v8 = vpop.xlane.xlu0 %70  ;;  %v106_v26 = vadd.f32 %v1859_v11, %v77_v7 }
  0xa1   :  { %v104_v20 = vadd.f32 %v1859_v11, %v71_v8 }
  0xa2   :  { %v118_v31 = vmax.f32 %v106_v26, 0.0 }
  0xa3   :  { %v83_v12 = vpop.xlane.xlu1 %82  ;;  %v116_v28 = vmax.f32 %v104_v20, 0.0 }
  0xa4   :  { %v80_v15 = vpop.xlane.xlu0 %79  ;;  %v108_v47 = vadd.f32 %v1859_v11, %v83_v12 }
  0xa5   :  { %v107_v37 = vadd.f32 %v1859_v11, %v80_v15 }
  0xa6   :  { %v120_v49 = vmax.f32 %v108_v47, 0.0 }
  0xa7   :  { %v89_v17 = vpop.xlane.xlu1 %88  ;;  %v119_v44 = vmax.f32 %v107_v37, 0.0 }
  0xa8   :  { %v86_v18 = vpop.xlane.xlu0 %85  ;;  %v110_v58 = vadd.f32 %v1859_v11, %v89_v17 }
  0xa9   :  { %v109_v56 = vadd.f32 %v1859_v11, %v86_v18 }
  0xaa   :  { %v122_v0 = vmax.f32 %v110_v58, 0.0 }
  0xab   :  { %v144_v23 = vpop.permute.xlu1 %143  ;;  %v121_v59 = vmax.f32 %v109_v56, 0.0 }
  0xac   :  { %v137_v24 = vpop.permute.xlu0 %136  ;;  %v1868_v34 = vadd.f32 %v144_v23, %v116_v28 }
  0xad   :  { %v1865_v27 = vadd.f32 %v137_v24, %v115_v19 }
  0xaf   :  { %252 = vperm.xlu1 %1636, %v1865_v27   ;;  %v151_v30 = vpop.permute.xlu1 %150 }
  0xb0   :  { %v1870_v35 = vadd.f32 %v151_v30, %v117_v25  ;;  %v165_v42 = vpop.permute.xlu0 %164 }
  0xb1   :  { %v1878_v45 = vadd.f32 %v165_v42, %v119_v44 }
  0xb2   :  { %258 = vperm.xlu0 %1637, %v1870_v35  }
  0xb3   :  { %255 = vperm.xlu1 %1636, %v1868_v34   ;;  %v158_v39 = vpop.permute.xlu1 %157 }
  0xb4   :  { %v1875_v40 = vadd.f32 %v158_v39, %v118_v31 }
  0xb7   :  { %261 = vperm.xlu1 %1636, %v1875_v40  }
  0xbb   :  { %264 = vperm.xlu1 %1636, %v1878_v45  }
  0xe1   :  { %v95_v48 = vpop.xlane.xlu0 %94 }
  0xe2   :  { %v112_v12 = vadd.f32 %v1859_v11, %v95_v48 }
  0xe4   :  { %v92_v52 = vpop.xlane.xlu1 %91  ;;  %v124_v18 = vmax.f32 %v112_v12, 0.0 }
  0xe5   :  { %v172_v53 = vpop.permute.xlu0 %171  ;;  %v111_v62 = vadd.f32 %v1859_v11, %v92_v52 }
  0xe6   :  { %v1882_v55 = vadd.f32 %v172_v53, %v120_v49 }
  0xe7   :  { %v123_v7 = vmax.f32 %v111_v62, 0.0 }
  0xe8   :  { %267 = vperm.xlu1 %1636, %v1882_v55   ;;  %v98_v57 = vpop.xlane.xlu1 %97 }
  0xe9   :  { %v113_v16 = vadd.f32 %v1859_v11, %v98_v57 }
  0xeb   :  { %v125_v19 = vmax.f32 %v113_v16, 0.0 }
  0xec   :  { %v179_v60 = vpop.permute.xlu1 %178 }
  0xed   :  { %v1888_v63 = vadd.f32 %v179_v60, %v121_v59 }
  0xef   :  { %270 = vperm.xlu1 %1636, %v1888_v63  }
  0xf0   :  { %v186_v2 = vpop.permute.xlu1 %185 }
  0xf1   :  { %v1891_v8 = vadd.f32 %v186_v2, %v122_v0 }
  0xf3   :  { %273 = vperm.xlu1 %1636, %v1891_v8  }
  0xf4   :  { %v193_v15 = vpop.permute.xlu1 %192 }
  0xf5   :  { %v1896_v17 = vadd.f32 %v193_v15, %v123_v7 }
  0xf7   :  { %276 = vperm.xlu1 %1636, %v1896_v17  }
  0xf8   :  { %v200_v5 = vpop.permute.xlu1 %199 }
  0xf9   :  { %v1899_v20 = vadd.f32 %v200_v5, %v124_v18 }
  0xfb   :  { %279 = vperm.xlu1 %1636, %v1899_v20  }
  0xfc   :  { %v207_v23 = vpop.permute.xlu1 %206 }
  0xfd   :  { %v1902_v24 = vadd.f32 %v207_v23, %v125_v19 }
  0xff   :  { %282 = vperm.xlu1 %1636, %v1902_v24  }
 0x100   :  { %v214_v28 = vpop.permute.xlu1 %213 }
 0x116   :  { %v101_v25 = vpop.xlane.xlu0 %100 }
 0x117   :  { %v114_v26 = vadd.f32 %v1859_v11, %v101_v25 }
 0x119   :  { %v126_v30 = vmax.f32 %v114_v26, 0.0 }
 0x11b   :  { %v1906_v31 = vadd.f32 %v214_v28, %v126_v30 }
 0x11d   :  { %285 = vperm.xlu1 %1636, %v1906_v31  }
 0x12a   :  { %v253_v37 = vpop.permute.xlu1 %252 }
 0x12b   :  { %v292_v52 = vrot.slane %v253_v37, %v1751_v3 }
 0x12d   :  { %v259_v48 = vpop.permute.xlu0 %258 }
 0x12e   :  { %v256_v39 = vpop.permute.xlu1 %255  ;;  %v300_v53 = vrot.slane %v259_v48, %v1751_v3 }
 0x12f   :  { %v296_v47 = vrot.slane %v256_v39, %v1751_v3 }
 0x131   :  { %v338_v11 = vsel %vm337_vm1, %v296_v47, %v292_v52 }
 0x132   :  { %v262_v42 = vpop.permute.xlu1 %261  ;;  %v340_v60 = vsel %vm339_vm2, %v300_v53, %v338_v11 }
 0x133   :  { %v304_v56 = vrot.slane %v262_v42, %v1751_v3 }
 0x135   :  { %v342_v0 = vsel %vm341_vm3, %v304_v56, %v340_v60 }
 0x136   :  { %v265_v44 = vpop.permute.xlu1 %264 }
 0x137   :  { %v308_v57 = vrot.slane %v265_v44, %v1751_v3 }
 0x139   :  { %v344_v2 = vsel %vm343_vm4, %v308_v57, %v342_v0 }
 0x163   :  { %v268_v49 = vpop.permute.xlu1 %267 }
 0x164   :  { %v312_v59 = vrot.slane %v268_v49, %v1751_v3 }
 0x166   :  { %v346_v12 = vsel %vm345_vm5, %v312_v59, %v344_v2 }
 0x16a   :  { %v271_v58 = vpop.permute.xlu1 %270 }
 0x16b   :  { %v316_v62 = vrot.slane %v271_v58, %v1751_v3 }
 0x16d   :  { %v348_v16 = vsel %vm347_vm6, %v316_v62, %v346_v12 }
 0x16e   :  { %v274_v7 = vpop.permute.xlu1 %273 }
 0x16f   :  { %v320_v15 = vrot.slane %v274_v7, %v1751_v3 }
 0x171   :  { %v350_v18 = vsel %vm349_vm7, %v320_v15, %v348_v16 }
 0x172   :  { %v357_v5 = vsel %vm356_vm8, %v350_v18, -inf  ;;  %v277_v19 = vpop.permute.xlu1 %276 }
 0x173   :  { %358 = vmax.xlane.f32.xlu1 %v357_v5  ;;  %v324_v30 = vrot.slane %v277_v19, %v1751_v3  ;;  %v1714_v19 = vmov 0.0  }
 0x174   :  { %1569 = vmatprep.subr.mxu0 %v1714_v19  ;;  %1574 = vmatprep.subr.mxu1 %v1714_v19 }
 0x175   :  { %1570 = vmatpush3.msra.mxu0 %v1760_v6  ;;  %1571 = vmatprep.mubr.msk.f32.mxu0 %vm1715_vm10, %v1714_v19 }
 0x176   :  { %v280_v23 = vpop.permute.xlu1 %279  ;;  %1575 = vmatpush3.msra.mxu1 %v1768_v10  ;;  %1576 = vmatprep.mubr.msk.f32.mxu1 %vm1715_vm10, %v1714_v19 }
 0x177   :  { %v328_v26 = vrot.slane %v280_v23, %v1751_v3  ;;  %1579 = vmatprep.subr.mxu0 %v1714_v19  ;;  %1584 = vmatprep.subr.mxu1 %v1714_v19 }
 0x179   :  { %v351_v39 = vsel %vm337_vm1, %v328_v26, %v324_v30 }
 0x17a   :  { %v283_v25 = vpop.permute.xlu1 %282 }
 0x17b   :  { %v332_v28 = vrot.slane %v283_v25, %v1751_v3 }
 0x17d   :  { %v352_v44 = vsel %vm339_vm2, %v332_v28, %v351_v39 }
 0x198   :  { %v286_v37 = vpop.permute.xlu1 %285 }
 0x199   :  { %v336_v42 = vrot.slane %v286_v37, %v1751_v3 }
 0x19b   :  { %v353_v47 = vsel %vm341_vm3, %v336_v42, %v352_v44 }
 0x19c   :  { %v361_v48 = vsel %vm360_vm9, %v353_v47, -inf }
 0x19d   :  { %362 = vmax.xlane.f32.xlu0 %v361_v48 }
 0x1fc   :  { %v359_v49 = vpop.xlane.xlu1 %358 }
 0x1fd   :  { %v369_v52 = vrot.slane %v359_v49, %v1809_v33  ;;  %v373_v53 = vrot.slane %v359_v49, %v1799_v29  ;;  %v377_v11 = vrot.slane %v359_v49, %v1806_v32  ;;  %v385_v56 = vrot.slane %v359_v49, %v161_v38 }
 0x1fe   :  { %v381_v57 = vrot.slane %v359_v49, %v1813_v36  ;;  %v393_v62 = vrot.slane %v359_v49, %v175_v51  ;;  %v389_v12 = vrot.slane %v359_v49, %v168_v50 }
 0x1ff   :  { %v426_v58 = vsub.f32 %v1865_v27, %v369_v52  ;;  %v427_v59 = vsub.f32 %v1868_v34, %v373_v53  ;;  %v428_v60 = vsub.f32 %v1870_v35, %v377_v11  ;;  %v430_v0 = vsub.f32 %v1878_v45, %v385_v56 }
 0x200   :  { %v429_v38 = vsub.f32 %v1875_v40, %v381_v57  ;;  %v432_v27 = vsub.f32 %v1888_v63, %v393_v62  ;;  %v397_v35 = vrot.slane %v359_v49, %v182_v54  ;;  %v431_v51 = vsub.f32 %v1882_v55, %v389_v12 }
 0x201   :  { %v438_v2 = vmul.f32 1.442695, %v426_v58  ;;  %v440_v7 = vmul.f32 1.442695, %v427_v59  ;;  %v442_v15 = vmul.f32 1.442695, %v428_v60 }
 0x202   :  { %v446_v34 = vmul.f32 1.442695, %v430_v0  ;;  %v444_v45 = vmul.f32 1.442695, %v429_v38  ;;  %v450_v16 = vmul.f32 1.442695, %v432_v27  ;;  %v433_v18 = vsub.f32 %v1891_v8, %v397_v35 }
 0x203   :  { %1638 = vpow2.f32 %v438_v2  ;;  %v448_v50 = vmul.f32 1.442695, %v431_v51 }
 0x204   :  { %1640 = vpow2.f32 %v440_v7  ;;  %v452_v40 = vmul.f32 1.442695, %v433_v18 }
 0x205   :  { %1642 = vpow2.f32 %v442_v15 }
 0x206   :  { %1644 = vpow2.f32 %v446_v34 }
 0x207   :  { %1646 = vpow2.f32 %v444_v45 }
 0x208   :  { %1648 = vpow2.f32 %v450_v16 }
 0x209   :  { %1650 = vpow2.f32 %v448_v50 }
 0x20a   :  { %1652 = vpow2.f32 %v452_v40 }
 0x210   :  { %v1639_v5 = vpop.eup %1638 }
 0x211   :  { %v1641_v63 = vpop.eup %1640  ;;  %475 = vperm.xlu1 %1636, %v1639_v5  }
 0x212   :  { %478 = vperm.xlu0 %1637, %v1641_v63   ;;  %v1643_v1 = vpop.eup %1642 }
 0x213   :  { %v1645_v54 = vpop.eup %1644 }
 0x214   :  { %v1647_v55 = vpop.eup %1646 }
 0x215   :  { %481 = vperm.xlu1 %1636, %v1643_v1   ;;  %v1649_v8 = vpop.eup %1648 }
 0x216   :  { %487 = vperm.xlu0 %1637, %v1645_v54   ;;  %v1651_v6 = vpop.eup %1650 }
 0x217   :  { %v1653_v23 = vpop.eup %1652 }
 0x219   :  { %484 = vperm.xlu1 %1636, %v1647_v55  }
 0x21a   :  { %493 = vperm.xlu0 %1637, %v1649_v8  }
 0x21d   :  { %490 = vperm.xlu1 %1636, %v1651_v6  }
 0x221   :  { %496 = vperm.xlu1 %1636, %v1653_v23  }
 0x226   :  { %v363_v25 = vpop.xlane.xlu0 %362 }
 0x227   :  { %v401_v10 = vrot.slane %v363_v25, %v1809_v33  ;;  %v405_v26 = vrot.slane %v363_v25, %v1799_v29  ;;  %v409_v28 = vrot.slane %v363_v25, %v1806_v32  ;;  %v413_v30 = vrot.slane %v363_v25, %v1813_v36 }
 0x229   :  { %v434_v37 = vsub.f32 %v1896_v17, %v401_v10  ;;  %v435_v39 = vsub.f32 %v1899_v20, %v405_v26  ;;  %v436_v42 = vsub.f32 %v1902_v24, %v409_v28  ;;  %v437_v44 = vsub.f32 %v1906_v31, %v413_v30 }
 0x22b   :  { %v454_v47 = vmul.f32 1.442695, %v434_v37  ;;  %v456_v48 = vmul.f32 1.442695, %v435_v39  ;;  %v458_v49 = vmul.f32 1.442695, %v436_v42 }
 0x22c   :  { %v460_v33 = vmul.f32 1.442695, %v437_v44 }
 0x22d   :  { %1654 = vpow2.f32 %v454_v47 }
 0x22e   :  { %1656 = vpow2.f32 %v456_v48 }
 0x22f   :  { %1658 = vpow2.f32 %v458_v49 }
 0x230   :  { %1660 = vpow2.f32 %v460_v33 }
 0x23a   :  { %v1655_v29 = vpop.eup %1654 }
 0x23b   :  { %v1657_v32 = vpop.eup %1656  ;;  %499 = vperm.xlu0 %1637, %v1655_v29  }
 0x23c   :  { %502 = vperm.xlu1 %1636, %v1657_v32   ;;  %v1659_v36 = vpop.eup %1658 }
 0x23d   :  { %v1661_v17 = vpop.eup %1660 }
 0x23f   :  { %505 = vperm.xlu0 %1637, %v1659_v36  }
 0x240   :  { %508 = vperm.xlu1 %1636, %v1661_v17  }
 0x28c   :  { %v476_v20 = vpop.permute.xlu1 %475 }
 0x28d   :  { %v513_v24 = vrot.slane %v476_v20, %v1751_v3  ;;  %v479_v31 = vpop.permute.xlu0 %478 }
 0x28e   :  { %v517_v52 = vrot.slane %v479_v31, %v1751_v3 }
 0x28f   :  { %1572 = vmatmul.mubr.msk.f32.vlgmr.msra.gmra.mxu0 %vm356_vm8, %v513_v24 }
 0x290   :  { %1577 = vmatmul.mubr.msk.f32.vlgmr.msra.gmra.mxu1 %vm356_vm8, %v517_v52  ;;  %v482_v53 = vpop.permute.xlu1 %481  ;;  %1580 = vmatpush3.msra.mxu0 %v1753_v4  ;;  %v558_v4 = vsel %vm337_vm1, %v517_v52, %v513_v24 }
 0x291   :  { %v521_v11 = vrot.slane %v482_v53, %v1751_v3  ;;  %v488_v56 = vpop.permute.xlu0 %487  ;;  %1581 = vmatprep.mubr.msk.f32.mxu0 %vm1715_vm10, %v1714_v19  ;;  %1589 = vmatprep.subr.mxu0 %v1714_v19 }
 0x292   :  { %1585 = vmatpush3.msra.mxu1 %v1766_v9  ;;  %1586 = vmatprep.mubr.msk.f32.mxu1 %vm1715_vm10, %v1714_v19  ;;  %v529_v58 = vrot.slane %v488_v56, %v1751_v3 }
 0x293   :  { %1582 = vmatmul.mubr.msk.f32.vlgmr.msra.gmra.mxu0 %vm356_vm8, %v521_v11  ;;  %1594 = vmatprep.subr.mxu1 %v1714_v19  ;;  %v559_v9 = vsel %vm339_vm2, %v521_v11, %v558_v4 }
 0x294   :  { %v485_v57 = vpop.permute.xlu1 %484  ;;  %1590 = vmatpush3.msra.mxu0 %v1776_v14  ;;  %1591 = vmatprep.mubr.msk.f32.mxu0 %vm1715_vm10, %v1714_v19 }
 0x295   :  { %v525_v59 = vrot.slane %v485_v57, %v1751_v3  ;;  %1599 = vmatprep.subr.mxu0 %v1714_v19  ;;  %v494_v60 = vpop.permute.xlu0 %493 }
 0x296   :  { %v537_v0 = vrot.slane %v494_v60, %v1751_v3 }
 0x297   :  { %v560_v62 = vsel %vm341_vm3, %v525_v59, %v559_v9  ;;  %1587 = vmatmul.mubr.msk.f32.vlgmr.msra.gmra.mxu1 %vm356_vm8, %v525_v59  ;;  %1592 = vmatmul.mubr.msk.f32.vlgmr.msra.gmra.mxu0 %vm356_vm8, %v529_v58 }
 0x298   :  { %v491_v14 = vpop.permute.xlu1 %490  ;;  %1595 = vmatpush3.msra.mxu1 %v1774_v13  ;;  %1596 = vmatprep.mubr.msk.f32.mxu1 %vm1715_vm10, %v1714_v19  ;;  %v561_v7 = vsel %vm343_vm4, %v529_v58, %v560_v62 }
 0x299   :  { %v533_v2 = vrot.slane %v491_v14, %v1751_v3  ;;  %1600 = vmatpush3.msra.mxu0 %v1788_v22  ;;  %1601 = vmatprep.mubr.msk.f32.mxu0 %vm1715_vm10, %v1714_v19 }
 0x29a   :  { %1604 = vmatprep.subr.mxu1 %v1714_v19  ;;  %1609 = vmatprep.subr.mxu0 %v1714_v19 }
 0x29b   :  { %v562_v13 = vsel %vm345_vm5, %v533_v2, %v561_v7  ;;  %1597 = vmatmul.mubr.msk.f32.vlgmr.msra.gmra.mxu1 %vm356_vm8, %v533_v2  ;;  %1602 = vmatmul.mubr.msk.f32.vlgmr.msra.gmra.mxu0 %vm356_vm8, %v537_v0 }
 0x29c   :  { %v497_v12 = vpop.permute.xlu1 %496  ;;  %1605 = vmatpush3.msra.mxu1 %v1786_v21  ;;  %1606 = vmatprep.mubr.msk.f32.mxu1 %vm1715_vm10, %v1714_v19  ;;  %v563_v38 = vsel %vm347_vm6, %v537_v0, %v562_v13 }
 0x29d   :  { %v541_v22 = vrot.slane %v497_v12, %v1751_v3  ;;  %1610 = vmatpush3.msra.mxu0 %v1824_v43  ;;  %1614 = vmatprep.subr.mxu1 %v1714_v19 }
 0x29e   :  { %1611 = vmatprep.mubr.msk.f32.mxu0 %vm1715_vm10, %v1714_v19  ;;  %1619 = vmatprep.subr.mxu0 %v1714_v19 }
 0x29f   :  { %1607 = vmatmul.mubr.msk.f32.vlgmr.msra.gmra.mxu1 %vm356_vm8, %v541_v22  ;;  %v564_v21 = vsel %vm349_vm7, %v541_v22, %v563_v38 }
 0x2a0   :  { %v570_v15 = vsel %vm356_vm8, %v564_v21, 0.0  ;;  %1615 = vmatpush3.msra.mxu1 %v1820_v41  ;;  %1616 = vmatprep.mubr.msk.f32.mxu1 %vm1715_vm10, %v1714_v19 }
 0x2a1   :  { %571 = vadd.xlane.f32.xlu0 %v570_v15  ;;  %1624 = vmatprep.subr.mxu1 %v1714_v19 }
 0x2b6   :  { %v500_v43 = vpop.permute.xlu0 %499 }
 0x2b7   :  { %v503_v27 = vpop.permute.xlu1 %502  ;;  %v545_v34 = vrot.slane %v500_v43, %v1751_v3 }
 0x2b8   :  { %v549_v35 = vrot.slane %v503_v27, %v1751_v3 }
 0x2b9   :  { %1612 = vmatmul.mubr.msk.f32.vlgmr.msra.gmra.mxu0 %vm356_vm8, %v545_v34 }
 0x2ba   :  { %1617 = vmatmul.mubr.msk.f32.vlgmr.msra.gmra.mxu1 %vm356_vm8, %v549_v35  ;;  %1620 = vmatpush3.msra.mxu0 %v1829_v46  ;;  %v506_v51 = vpop.permute.xlu0 %505  ;;  %v565_v16 = vsel %vm337_vm1, %v549_v35, %v545_v34 }
 0x2bb   :  { %v509_v41 = vpop.permute.xlu1 %508  ;;  %1625 = vmatpush3.msra.mxu1 %v1851_v61  ;;  %v553_v45 = vrot.slane %v506_v51, %v1751_v3  ;;  %1621 = vmatprep.mubr.msk.f32.mxu0 %vm1715_vm10, %v1714_v19 }
 0x2bc   :  { %v557_v18 = vrot.slane %v509_v41, %v1751_v3  ;;  %1626 = vmatprep.mubr.msk.f32.mxu1 %vm1715_vm10, %v1714_v19 }
 0x2bd   :  { %1622 = vmatmul.mubr.msk.f32.vlgmr.msra.gmra.mxu0 %vm356_vm8, %v553_v45  ;;  %v566_v46 = vsel %vm339_vm2, %v553_v45, %v565_v16 }
 0x2be   :  { %1627 = vmatmul.mubr.msk.f32.vlgmr.msra.gmra.mxu1 %vm356_vm8, %v557_v18  ;;  %v567_v61 = vsel %vm341_vm3, %v557_v18, %v566_v46 }
 0x2bf   :  { %v573_v50 = vsel %vm360_vm9, %v567_v61, 0.0 }
 0x2c0   :  { %574 = vadd.xlane.f32.xlu1 %v573_v50 }
 0x32a   :  { %v572_v40 = vpop.xlane.xlu0 %571 }
 0x32b   :  { %1662 = vrcp.f32 %v572_v40 }
 0x338   :  { %v1663_v5 = vpop.eup %1662 }
 0x339   :  { %v1444_v3 = vrot.slane %v1663_v5, 1  ;;  %v1445_v8 = vrot.slane %v1663_v5, 2  ;;  %v1446_v26 = vrot.slane %v1663_v5, 3  ;;  %v1447_v28 = vrot.slane %v1663_v5, 4 }
 0x33a   :  { %v1448_v32 = vrot.slane %v1663_v5, 5  ;;  %v1449_v36 = vrot.slane %v1663_v5, 6  ;;  %v1450_v58 = vrot.slane %v1663_v5, 7 }
 0x349   :  { %v575_v12 = vpop.xlane.xlu1 %574 }
 0x34a   :  { %1664 = vrcp.f32 %v575_v12 }
 0x34f   :  { %v644_v63 = vpop.f32.mrf.mxu0 }
 0x350   :  { %v716_v1 = vpop.f32.mrf.mxu1  ;;  %v1466_v42 = vmul.f32 %v1663_v5, %v644_v63 }
 0x351   :  { %v1573_v54 = vpop.f32.mrf.mxu0  ;;  %v1467_v55 = vmul.f32 %v1444_v3, %v716_v1 }
 0x352   :  { %v1578_v19 = vpop.f32.mrf.mxu1 }
 0x353   :  { %v788_v6 = vpop.f32.mrf.mxu0  ;;  %v1490_v10 = vrot.slane %v1467_v55, 7 }
 0x354   :  { %v1468_v23 = vmul.f32 %v1445_v8, %v788_v6 }
 0x355   :  { %v1583_v25 = vpop.f32.mrf.mxu0  ;;  %v1491_v33 = vsel %vm337_vm1, %v1490_v10, %v1466_v42 }
 0x356   :  { %v1492_v30 = vrot.slane %v1468_v23, 6 }
 0x357   :  { %v860_v37 = vpop.f32.mrf.mxu1  ;;  %v932_v39 = vpop.f32.mrf.mxu0 }
 0x358   :  { %v1469_v44 = vmul.f32 %v1446_v26, %v860_v37  ;;  %v1470_v47 = vmul.f32 %v1447_v28, %v932_v39  ;;  %v1493_v17 = vsel %vm339_vm2, %v1492_v30, %v1491_v33  ;;  %v1665_v22 = vpop.eup %1664 }
 0x359   :  { %v1588_v48 = vpop.f32.mrf.mxu1  ;;  %v1593_v49 = vpop.f32.mrf.mxu0  ;;  %v1451_v21 = vrot.slane %v1665_v22, 1  ;;  %v1452_v35 = vrot.slane %v1665_v22, 2  ;;  %v1453_v45 = vrot.slane %v1665_v22, 3 }
 0x35a   :  { %v1494_v29 = vrot.slane %v1469_v44, 5  ;;  %v1496_v20 = vrot.slane %v1470_v47, 4 }
 0x35b   :  { %v1004_v24 = vpop.f32.mrf.mxu1  ;;  %v1076_v31 = vpop.f32.mrf.mxu0 }
 0x35c   :  { %v1495_v52 = vsel %vm341_vm3, %v1494_v29, %v1493_v17  ;;  %v1471_v53 = vmul.f32 %v1448_v32, %v1004_v24  ;;  %v1472_v11 = vmul.f32 %v1449_v36, %v1076_v31 }
 0x35d   :  { %v1598_v56 = vpop.f32.mrf.mxu1  ;;  %v1603_v57 = vpop.f32.mrf.mxu0  ;;  %v1497_v59 = vsel %vm343_vm4, %v1496_v20, %v1495_v52 }
 0x35e   :  { %v1498_v4 = vrot.slane %v1471_v53, 3  ;;  %v1500_v9 = vrot.slane %v1472_v11, 2 }
 0x35f   :  { %v1148_v60 = vpop.f32.mrf.mxu1 }
 0x360   :  { %v1499_v62 = vsel %vm345_vm5, %v1498_v4, %v1497_v59  ;;  %v1473_v14 = vmul.f32 %v1450_v58, %v1148_v60 }
 0x361   :  { %v1608_v0 = vpop.f32.mrf.mxu1  ;;  %v1501_v7 = vsel %vm347_vm6, %v1500_v9, %v1499_v62 }
 0x362   :  { %v1502_v2 = vrot.slane %v1473_v14, 1 }
 0x364   :  { %v1503_v13 = vsel %vm349_vm7, %v1502_v2, %v1501_v7 }
 0x365   :  { %1512 = vst.msk [vmem:[#allocation6] sm:$0xff] %vm65_vm0, %v1503_v13 }
 0x379   :  { %v1220_v38 = vpop.f32.mrf.mxu0 }
 0x37a   :  { %v1292_v15 = vpop.f32.mrf.mxu1  ;;  %v1474_v46 = vmul.f32 %v1665_v22, %v1220_v38 }
 0x37b   :  { %v1475_v43 = vmul.f32 %v1451_v21, %v1292_v15  ;;  %v1613_v27 = vpop.f32.mrf.mxu0 }
 0x37c   :  { %v1618_v34 = vpop.f32.mrf.mxu1 }
 0x37d   :  { %v1504_v51 = vrot.slane %v1475_v43, 7  ;;  %v1364_v41 = vpop.f32.mrf.mxu0 }
 0x37e   :  { %v1476_v16 = vmul.f32 %v1452_v35, %v1364_v41  ;;  %v1436_v18 = vpop.f32.mrf.mxu1 }
 0x37f   :  { %v1477_v61 = vmul.f32 %v1453_v45, %v1436_v18  ;;  %v1623_v50 = vpop.f32.mrf.mxu0  ;;  %v1505_v63 = vsel %vm337_vm1, %v1504_v51, %v1474_v46 }
 0x380   :  { %v1506_v40 = vrot.slane %v1476_v16, 6  ;;  %v1628_v5 = vpop.f32.mrf.mxu1 }
 0x381   :  { %v1508_v1 = vrot.slane %v1477_v61, 5 }
 0x382   :  { %v1507_v3 = vsel %vm339_vm2, %v1506_v40, %v1505_v63 }
 0x383   :  { %v1509_v54 = vsel %vm341_vm3, %v1508_v1, %v1507_v3 }
 0x384   :  { %1514 = vst.msk [vmem:[#allocation6 + $0x8] sm:$0xf] %vm1513_vm11, %v1509_v54 }
 0x385   :  { %1697 = shalt.err (!%p1694_p9)
}
 0x386   :  { %1526 = dma.vmem_to_hbm [thread:$0]  %s1521_s27, 256, %s2066_s4, [#allocation5], %s1711_s18, %s1711_s18, %s1712_s19  }
 0x387   :  { %1708 = dma.done.wait [#allocation5], 256  }
 0x388   :  { %1709 = vsyncadd [#allocation5], 4294967040 }
 0x389   :  { %1530 = vsyncpa [#allocation4], 1 }
 0x38a   :  { %1531 = vsyncpa [#allocation5], 1 }

</bundles_post_ra>
